<compile_context>
chip_gen: v5e
topology: v5e:2x2
jax: 0.10.0
libtpu: 0.0.40
codegen_flags: <defaults>
</compile_context>

<pallas_src>
import jax
import jax.numpy as jnp
from jax.experimental import pallas as pl
from jax.experimental.pallas import tpu as pltpu


def _round_up(v, m):
    return (v + m - 1) // m * m


def _sublane_min(dtype):
    bits = jnp.dtype(dtype).itemsize * 8
    return {32: 8, 16: 16, 8: 32}.get(bits, 8)


def _linear_kernel_f32_out(x_ref, w_ref, b_ref, o_ref):
    """y tile accumulated directly in the K-resident f32 output block.

    x_ref: [tm, tk], w_ref: [tk, tn] (weight pre-transposed to [K, N]),
    b_ref: [1, tn], o_ref: [tm, tn] float32.
    """
    k = pl.program_id(2)

    @pl.when(k == 0)
    def _():
        o_ref[...] = jnp.zeros_like(o_ref)

    o_ref[...] += jnp.dot(x_ref[...], w_ref[...],
                          preferred_element_type=jnp.float32)

    @pl.when(k == pl.num_programs(2) - 1)
    def _():
        # Bias add only in the epilogue, off the K-loop critical path.
        o_ref[...] += b_ref[...].astype(jnp.float32)


def _linear_kernel_scratch(x_ref, w_ref, b_ref, o_ref, acc_ref):
    """Same contraction, but with an f32 VMEM accumulator for narrow outputs."""
    k = pl.program_id(2)

    @pl.when(k == 0)
    def _():
        acc_ref[...] = jnp.zeros_like(acc_ref)

    acc_ref[...] += jnp.dot(x_ref[...], w_ref[...],
                            preferred_element_type=jnp.float32)

    @pl.when(k == pl.num_programs(2) - 1)
    def _():
        o_ref[...] = (acc_ref[...]
                      + b_ref[...].astype(jnp.float32)).astype(o_ref.dtype)


def my_linear(x, weight, bias, *, tm=512, tn=512, tk=512,
              out_dtype=None, compute_dtype=None, force_pallas=False):
    """y = x @ weight.T + bias.  x: [M, K], weight: [N, K] (PyTorch), bias: [N]."""
    M, K = x.shape
    N, K2 = weight.shape
    assert K == K2 and bias.shape == (N,)

    out_dtype = jnp.dtype(out_dtype) if out_dtype is not None else jnp.dtype(x.dtype)

    # Small-problem early-out: padding (10->128, 5->128) plus ~0.35 us of
    # pallas_call/grid overhead makes the kernel slower than the XLA fallback
    # for toy shapes like the tutorial's 16x10x5 case.
    if not force_pallas and (M * N * K) < (128 ** 3):
        return (jnp.dot(x, weight.T) + bias).astype(out_dtype)

    # One-time [N, K] -> [K, N] layout change (amortized under jit for reused
    # weights) so the kernel contracts (M,K)x(K,N) with no per-step transpose.
    w_kn = weight.T
    if compute_dtype is not None:
        # bf16 operands + f32 accumulate: MXU-native and half the input DMA.
        x = x.astype(compute_dtype)
        w_kn = w_kn.astype(compute_dtype)
    in_dtype = jnp.dtype(x.dtype)

    # Sublane minimum for the second-to-last block dim (8 for 32-bit, 16 for
    # 16-bit); tm must satisfy it for both the input and the output tiles.
    sub = max(_sublane_min(in_dtype), _sublane_min(out_dtype))

    # Clamp tiles to the aligned problem extents.  (This also covers the
    # "cover the small operand fully" case: if N_pad <= tn the whole weight
    # matrix streams from HBM exactly once.)
    tm = min(tm, _round_up(M, sub))
    tn = min(tn, _round_up(N, 128))
    tk = min(tk, _round_up(K, 128))
    M_pad = _round_up(M, tm)
    N_pad = _round_up(N, tn)
    K_pad = _round_up(K, tk)

    # v7x has 2 TensorCores sharded over the "parallel" grid axes: if both
    # parallel axes collapsed to one block, split M so neither core idles.
    # (Harmless single extra grid step on single-TC v5e/v6e.)
    if M_pad // tm == 1 and N_pad // tn == 1 and M_pad >= 2 * sub:
        tm = _round_up(pl.cdiv(M_pad, 2), sub)
        M_pad = _round_up(M, tm)

    if (M_pad, K_pad) != (M, K):
        x = jnp.pad(x, ((0, M_pad - M), (0, K_pad - K)))
    if (K_pad, N_pad) != (K, N):
        w_kn = jnp.pad(w_kn, ((0, K_pad - K), (0, N_pad - N)))
    b2d = jnp.pad(bias, (0, N_pad - N)).reshape(1, N_pad)

    grid = (M_pad // tm, N_pad // tn, K_pad // tk)

    use_scratch = out_dtype != jnp.dtype(jnp.float32)
    kernel = _linear_kernel_scratch if use_scratch else _linear_kernel_f32_out
    scratch = [pltpu.VMEM((tm, tn), jnp.float32)] if use_scratch else []

    in_bytes = in_dtype.itemsize
    out_bytes = out_dtype.itemsize
    bias_bytes = jnp.dtype(bias.dtype).itemsize

    # Estimated per-call VMEM (double-buffered inputs/outputs + scratch).
    vmem_est = (2 * (tm * tk + tk * tn) * in_bytes
                + 2 * tm * tn * out_bytes
                + (tm * tn * 4 if use_scratch else 0)
                + 2 * tn * bias_bytes)
    compiler_kwargs = dict(
        dimension_semantics=("parallel", "parallel", "arbitrary"))
    if vmem_est > 12 * 1024 * 1024:
        # Raise the scoped-VMEM limit (v5e default is only 16 MiB) but never
        # budget past ~48 MiB so the tiling still fits v7x's 64 MiB physical.
        compiler_kwargs["vmem_limit_bytes"] = min(int(vmem_est * 1.5),
                                                  48 * 1024 * 1024)

    # bytes_accessed reflects tiled HBM reuse: x is re-read N_pad/tn times,
    # W is re-read M_pad/tm times.
    cost = pl.CostEstimate(
        flops=2 * M_pad * N_pad * K_pad,
        bytes_accessed=(M_pad * K_pad * in_bytes * (N_pad // tn)
                        + K_pad * N_pad * in_bytes * (M_pad // tm)
                        + M_pad * N_pad * out_bytes
                        + N_pad * bias_bytes),
        transcendentals=0)

    out = pl.pallas_call(
        kernel,
        out_shape=jax.ShapeDtypeStruct((M_pad, N_pad), out_dtype),
        grid_spec=pltpu.PrefetchScalarGridSpec(
            num_scalar_prefetch=0,
            grid=grid,
            in_specs=[
                pl.BlockSpec((tm, tk), lambda i, j, k: (i, k)),   # x tile
                pl.BlockSpec((tk, tn), lambda i, j, k: (k, j)),   # W tile [K,N]
                pl.BlockSpec((1, tn), lambda i, j, k: (0, j)),    # bias tile
            ],
            out_specs=pl.BlockSpec((tm, tn), lambda i, j, k: (i, j)),
            scratch_shapes=scratch,
        ),
        compiler_params=pltpu.CompilerParams(**compiler_kwargs),
        cost_estimate=cost,
    )(x, w_kn, b2d)

    return out[:M, :N]


if __name__ == "__main__":
    key = jax.random.PRNGKey(0)
    kx, kw, kb, k2 = jax.random.split(key, 4)

    # --- Tutorial shapes: x = FloatTensor(16, 10), Linear(10, 5) ---
    batch, input_size, output_size = 16, 10, 5
    x = jax.random.normal(kx, (batch, input_size), dtype=jnp.float32)
    bound = 1.0 / (input_size ** 0.5)
    weight = jax.random.uniform(kw, (output_size, input_size),
                                dtype=jnp.float32, minval=-bound, maxval=bound)
    bias = jax.random.uniform(kb, (output_size,),
                              dtype=jnp.float32, minval=-bound, maxval=bound)
    y_ref = x @ weight.T + bias

    # Auto path: tiny problem takes the XLA early-out.
    y_small = my_linear(x, weight, bias)
    jax.block_until_ready(y_small)
    assert y_small.shape == (batch, output_size)
    assert jnp.allclose(y_small, y_ref, atol=1e-5, rtol=1e-5)

    # Forced-Pallas path on the tutorial shape (exercises padding + epilogue).
    y_small_pl = my_linear(x, weight, bias, force_pallas=True)
    jax.block_until_ready(y_small_pl)
    assert y_small_pl.shape == (batch, output_size)
    assert jnp.allclose(y_small_pl, y_ref, atol=1e-5, rtol=1e-5)

    # --- Larger f32 shape: multi-tile grid, K accumulation, no scratch ---
    M2, K2_, N2 = 256, 512, 384
    ka, kb2, kc = jax.random.split(k2, 3)
    x2 = jax.random.normal(ka, (M2, K2_), dtype=jnp.float32)
    w2 = jax.random.normal(kb2, (N2, K2_), dtype=jnp.float32) * 0.02
    b2 = jax.random.normal(kc, (N2,), dtype=jnp.float32)
    y2_ref = x2 @ w2.T + b2

    y2 = my_linear(x2, w2, b2)
    jax.block_until_ready(y2)
    assert y2.shape == (M2, N2)
    assert jnp.allclose(y2, y2_ref, atol=1e-3, rtol=1e-3)

    # bf16 compute on f32 inputs/outputs (MXU-native operands, f32 accumulate).
    y2_bf = my_linear(x2, w2, b2, compute_dtype=jnp.bfloat16)
    jax.block_until_ready(y2_bf)
    assert y2_bf.dtype == jnp.float32
    assert jnp.allclose(y2_bf, y2_ref, atol=1e-1, rtol=1e-1)

    # --- bf16 end-to-end (bf16 output -> f32 scratch-accumulator kernel) ---
    M3, K3, N3 = 128, 256, 256
    k3a, k3b, k3c = jax.random.split(ka, 3)
    x3 = jax.random.normal(k3a, (M3, K3), dtype=jnp.float32).astype(jnp.bfloat16)
    w3 = (jax.random.normal(k3b, (N3, K3), dtype=jnp.float32) * 0.05
          ).astype(jnp.bfloat16)
    b3 = jax.random.normal(k3c, (N3,), dtype=jnp.float32).astype(jnp.bfloat16)

    y3 = my_linear(x3, w3, b3)
    jax.block_until_ready(y3)
    assert y3.shape == (M3, N3) and y3.dtype == jnp.bfloat16
    y3_ref = (x3.astype(jnp.float32) @ w3.astype(jnp.float32).T
              + b3.astype(jnp.float32))
    assert jnp.allclose(y3.astype(jnp.float32), y3_ref, atol=5e-2, rtol=5e-2)

    print("KERNEL_OK")
</pallas_src>

<mosaic_0001>
module attributes {stable_mosaic.version = 11 : i64} {
  func.func @_linear_kernel_f32_out(%arg0: i32, %arg1: i32, %arg2: i32, %arg3: memref<8x128xf32, #tpu.memory_space<vmem>>, %arg4: memref<128x128xf32, #tpu.memory_space<vmem>>, %arg5: memref<1x128xf32, #tpu.memory_space<vmem>>, %arg6: memref<8x128xf32, #tpu.memory_space<vmem>>) attributes {dimension_semantics = [#tpu.dimension_semantics<parallel>, #tpu.dimension_semantics<parallel>, #tpu.dimension_semantics<arbitrary>], iteration_bounds = array<i64: 2, 1, 1>, scalar_prefetch = 0 : i64, scratch_operands = 0 : i64, tpu.core_type = #tpu.core_type<tc>, window_params = [{transform_indices = @transform_0, window_bounds = array<i64: 8, 128>}, {transform_indices = @transform_1, window_bounds = array<i64: 128, 128>}, {transform_indices = @transform_2, window_bounds = array<i64: 1, 128>}, {transform_indices = @transform_3, window_bounds = array<i64: 8, 128>}]} {
    %c0_i32 = arith.constant 0 : i32
    %0 = arith.cmpi eq, %arg2, %c0_i32 : i32
    %1 = arith.extui %0 : i1 to i32
    %c0_i32_0 = arith.constant 0 : i32
    %2 = arith.cmpi ne, %1, %c0_i32_0 : i32
    scf.if %2 {
      %cst_10 = arith.constant 0.000000e+00 : f32
      %12 = vector.broadcast %cst_10 : f32 to vector<8x128xf32>
      %c0_11 = arith.constant 0 : index
      %c0_12 = arith.constant 0 : index
      %13 = vector.load %arg6[%c0_11, %c0_12] : memref<8x128xf32, #tpu.memory_space<vmem>>, vector<8x128xf32>
      tpu.vector_store %arg6[%c0_11, %c0_12], %12 {strides = array<i32>} : memref<8x128xf32, #tpu.memory_space<vmem>>, vector<8x128xf32>,
    } else {
    }
    %c0 = arith.constant 0 : index
    %c0_1 = arith.constant 0 : index
    %3 = vector.load %arg6[%c0, %c0_1] : memref<8x128xf32, #tpu.memory_space<vmem>>, vector<8x128xf32>
    %c0_2 = arith.constant 0 : index
    %c0_3 = arith.constant 0 : index
    %4 = vector.load %arg3[%c0_2, %c0_3] : memref<8x128xf32, #tpu.memory_space<vmem>>, vector<8x128xf32>
    %c0_4 = arith.constant 0 : index
    %c0_5 = arith.constant 0 : index
    %5 = vector.load %arg4[%c0_4, %c0_5] : memref<128x128xf32, #tpu.memory_space<vmem>>, vector<128x128xf32>
    %cst = arith.constant dense<0.000000e+00> : vector<8x128xf32>
    %6 = tpu.matmul %4, %5, %cst {dimension_numbers = #tpu.dot_dimension_numbers<[1], [0], [0], [1], [0, 0, 1, 1], [], []>} : vector<8x128xf32>, vector<128x128xf32>, vector<8x128xf32> -> vector<8x128xf32>
    %7 = arith.addf %3, %6 : vector<8x128xf32>
    %c0_6 = arith.constant 0 : index
    %c0_7 = arith.constant 0 : index
    %8 = vector.load %arg6[%c0_6, %c0_7] : memref<8x128xf32, #tpu.memory_space<vmem>>, vector<8x128xf32>
    tpu.vector_store %arg6[%c0_6, %c0_7], %7 {strides = array<i32>} : memref<8x128xf32, #tpu.memory_space<vmem>>, vector<8x128xf32>,
    %c0_i32_8 = arith.constant 0 : i32
    %9 = arith.cmpi eq, %arg2, %c0_i32_8 : i32
    %10 = arith.extui %9 : i1 to i32
    %c0_i32_9 = arith.constant 0 : i32
    %11 = arith.cmpi ne, %10, %c0_i32_9 : i32
    scf.if %11 {
      %c0_10 = arith.constant 0 : index
      %c0_11 = arith.constant 0 : index
      %12 = vector.load %arg6[%c0_10, %c0_11] : memref<8x128xf32, #tpu.memory_space<vmem>>, vector<8x128xf32>
      %c0_12 = arith.constant 0 : index
      %c0_13 = arith.constant 0 : index
      %13 = vector.load %arg5[%c0_12, %c0_13] : memref<1x128xf32, #tpu.memory_space<vmem>>, vector<1x128xf32>
      %14 = vector.broadcast %13 : vector<1x128xf32> to vector<8x128xf32>
      %15 = arith.addf %12, %14 : vector<8x128xf32>
      %c0_14 = arith.constant 0 : index
      %c0_15 = arith.constant 0 : index
      %16 = vector.load %arg6[%c0_14, %c0_15] : memref<8x128xf32, #tpu.memory_space<vmem>>, vector<8x128xf32>
      tpu.vector_store %arg6[%c0_14, %c0_15], %15 {strides = array<i32>} : memref<8x128xf32, #tpu.memory_space<vmem>>, vector<8x128xf32>,
    } else {
    }
    return
  }
  func.func @transform_0(%arg0: i32, %arg1: i32, %arg2: i32) -> (i32, i32) {
    %c0_i32 = arith.constant 0 : i32
    return %arg0, %arg2 : i32, i32
  }
  func.func @transform_1(%arg0: i32, %arg1: i32, %arg2: i32) -> (i32, i32) {
    %c0_i32 = arith.constant 0 : i32
    return %arg2, %arg1 : i32, i32
  }
  func.func @transform_2(%arg0: i32, %arg1: i32, %arg2: i32) -> (i32, i32) {
    %c0_i32 = arith.constant 0 : i32
    %c0_i32_0 = arith.constant 0 : i32
    return %c0_i32, %arg1 : i32, i32
  }
  func.func @transform_3(%arg0: i32, %arg1: i32, %arg2: i32) -> (i32, i32) {
    %c0_i32 = arith.constant 0 : i32
    return %arg0, %arg1 : i32, i32
  }
}

</mosaic_0001>

<bundles_post_ra>
// kernel: tpu_custom_call.1
= control target key start
LH: loop header
LB: loop body
LE: loop exit
PB: predicated region body
PF: predicated region fallthrough
CT: control target
= control target key end

     0   :  { %8 = vsyncpa [#allocation3], 0  ;;  %s853_s0 = inlined_call_operand.hbm [shape: f32[16,128], index: 0, kind: input, shape index: {}]   ;;  %s854_s1 = inlined_call_operand.hbm [shape: f32[128,128], index: 1, kind: input, shape index: {}]   ;;  %s855_s2 = inlined_call_operand.vmem [shape: f32[1,128], index: 2, kind: input, shape index: {}]   ;;  %s856_s3 = inlined_call_operand.hbm [shape: f32[16,128], index: 3, kind: output, shape index: {}]  }
   0x1   :  { %10 = vsyncpa [#allocation3 + $0x1], 0 }
   0x2   :  { %11 = vsyncpa [#allocation6], 0 }
   0x3   :  { %12 = vsyncpa [#allocation4], 0 }
   0x4   :  { %14 = vsyncpa [#allocation4 + $0x1], 0  ;;  %s700_s12 = smov 0   ;;  %s702_s13 = smov 0  }
   0x5   :  { %s704_s14 = smov 0   ;;  %s706_s15 = smov 0  }
   0x6   :  { %s708_s16 = smov 0   ;;  %s710_s17 = smov 0  }
   0x7 LB: > { %s436_s18 = sadd.s32 4294967295, %s675_s17   ;;  %p438_p0 = scmp.ge.s32.totalorder %s675_s17, 1  ;;  %s675_s17 = sphi %s710_s17, %s20_s17   ;;  %s671_s16 = sphi %s708_s16, %s867_s16   ;;  %s667_s15 = sphi %s706_s15, %s866_s15   ;;  %s663_s14 = sphi %s704_s14, %s865_s14   ;;  %s659_s13 = sphi %s702_s13, %s864_s13   ;;  %s655_s12 = sphi %s700_s12, %s863_s12  }
   0x8   : > { %p732_p1 = scmp.eq.s32.totalorder %s436_s18, 0  ;;  %p154_p2 = scmp.lt.s32.totalorder %s675_s17, 3 }
   0x9   : > { %s169_s22 = sshll.u32 %s854_s1, 4  ;;  %s677_s24 = smov [#allocation5]   ;;  %s170_s22 = int_to_ptr.hbm [resolvable:$true] %s169_s22 }
   0xa   : > { %p740_p3 = pnand %p438_p0, %p154_p2  ;;  %s171_s25 = sshll.u32 %s677_s24, 4  ;;  %s172_s25 = int_to_ptr.vmem [resolvable:$true] %s171_s25 }
   0xb   : > { %p441_p6 = scmp.ge.s32.totalorder %s675_s17, 2  ;;  %s678_s26 = smov 128  }
   0xc   : > { %p460_p4 = pneg %p740_p3  ;;  %s679_s27 = smov 8  }
   0xd   : > { %s437_s28 = sadd.s32 4294967294, %s675_s17   ;;  %s39_s29 = sadd.s32 1, %s671_s16 }
   0xe   : > { %p461_p5 = pnand %p460_p4, %p732_p1  ;;  %s48_s30 = sadd.s32 1, %s663_s14 }
   0xf   : > { %p41_p7 = scmp.ge.s32.totalorder %s39_s29, 2  ;;  %p55_p8 = scmp.ne.s32.totalorder %s663_s14, %s659_s13 }
  0x10   : > { %463 = dma.hbm_to_vmem [thread:$0]  (!%p461_p5), %s170_s22, 2048, %s172_s25, [#allocation6], %s678_s26, %s678_s26, %s679_s27  }
  0x11   : > { %p56_p9 = scmp.eq.s32.totalorder %s675_s17, 0  ;;  %p61_p10 = scmp.ne.s32.totalorder %s659_s13, %s655_s12 }
  0x12   : > { %s869_s29 = smov (%p41_p7, %s39_s29), 0  ;;  %p141_p13 = scmp.eq.s32.totalorder %s436_s18, 1 }
  0x13   : > { %p759_p11 = por %p56_p9, %p55_p8  ;;  %p765_p12 = por %p732_p1, %p61_p10 }
  0x14   : > { %s43_s6 = ssub.s32 %s671_s16, %s869_s29  ;;  %p147_p2 = scmp.eq.s32.totalorder %s437_s28, 1 }
  0x15   : > { %p46_p0 = scmp.eq.s32.totalorder %s43_s6, 0  ;;  %p771_p4 = por %p141_p13, %p55_p8 }
  0x16   : > { %p473_p5 = scmp.lt.s32.totalorder %s675_s17, 2  ;;  %p779_p7 = por %p147_p2, %p61_p10 }
  0x17   : > { %s777_s8 = scalar_select %p46_p0, %s663_s14, %s48_s30  }
  0x18   : > { %s191_s10 = sand.u32 1, %s663_s14   ;;  %s443_s20 = sshll.u32 %s671_s16, 3 }
  0x19   : > { %s442_s11 = sshll.u32 %s191_s10, 3  ;;  %s200_s18 = scalar_lea.hbm %s853_s0, %s443_s20 }
  0x1a   : > { %s195_s24 = scalar_lea.vmem [#allocation2], %s442_s11  ;;  %s202_s26 = sshll.u32 %s200_s18, 4  ;;  %s203_s26 = int_to_ptr.hbm [resolvable:$true] %s202_s26 }
  0x1b   : > { %s204_s25 = sshll.u32 %s195_s24, 4  ;;  %p465_p8 = pnand %p473_p5, %p759_p11  ;;  %s205_s25 = int_to_ptr.vmem [resolvable:$true] %s204_s25 }
  0x1c   : > { %s192_s27 = scalar_lea.sflag [#allocation3], %s191_s10  ;;  %213 = sbr.rel (%p740_p3) target bundleno = 199 (0xc7), region = 32 }
  0x1d   : > { %467 = dma.hbm_to_vmem [thread:$0]  (!%p465_p8), %s203_s26, 128, %s205_s25, %s192_s27  }
  0x1e   : > { %s793_s28 = sand.u32 (!%p740_p3), 1, %s659_s13  }
  0x1f   : > { %s445_s30 = sshll.u32 (!%p740_p3), %s793_s28, 3  ;;  %s216_s6 = scalar_lea.sflag (!%p740_p3), [#allocation3], %s793_s28 }
  0x20   : > { %s799_s11 = scalar_lea.vmem (!%p740_p3), [#allocation2], %s445_s30 }
  0x21   : > { %642 = dma.done.wait (%p765_p12), %s216_s6, 128  }
  0x22   : > { %644 = vsyncadd (%p765_p12), %s216_s6, 4294967168 }
  0x23   : > { %646 = dma.done.wait (%p732_p1), [#allocation6], 2048  }
  0x24   : > { %648 = vsyncadd (%p732_p1), [#allocation6], 4294965248  ;;  %v277_v0 = vld [vmem:[#allocation5 + $0x78] sm:$0xff]  ;;  %v276_v1 = vld [vmem:[#allocation5 + $0x70] sm:$0xff]  ;;  %s449_s19 = sshll.u32 %s667_s15, 3  ;;  %s250_s21 = scalar_lea.vmem [#allocation7], %s445_s30 }
  0x25   : > { %278 = vmatpush.msra.mxu0 %v277_v0  ;;  %v275_v2 = vld [vmem:[#allocation5 + $0x68] sm:$0xff]  ;;  %v274_v3 = vld [vmem:[#allocation5 + $0x60] sm:$0xff]  ;;  %v273_v4 = vld [vmem:[#allocation5 + $0x58] sm:$0xff]  ;;  %s322_s5 = scalar_lea.hbm %s856_s3, %s449_s19  ;;  %s324_s22 = sshll.u32 %s250_s21, 4  ;;  %s325_s22 = int_to_ptr.vmem [resolvable:$true] %s324_s22 }
  0x26   : > { %v272_v5 = vld [vmem:[#allocation5 + $0x50] sm:$0xff]  ;;  %v271_v6 = vld [vmem:[#allocation5 + $0x48] sm:$0xff]  ;;  %v270_v7 = vld [vmem:[#allocation5 + $0x40] sm:$0xff]  ;;  %s326_s18 = sshll.u32 %s322_s5, 4  ;;  %s311_s24 = scalar_lea.sflag [#allocation4], %s793_s28  ;;  %s327_s18 = int_to_ptr.hbm [resolvable:$true] %s326_s18 }
  0x27   : > { %279 = vmatpush.msra.mxu0 %v276_v1  ;;  %v269_v8 = vld [vmem:[#allocation5 + $0x38] sm:$0xff]  ;;  %v268_v9 = vld [vmem:[#allocation5 + $0x30] sm:$0xff]  ;;  %v267_v10 = vld [vmem:[#allocation5 + $0x28] sm:$0xff]  ;;  %s603_s15 = sshra.s32 %s327_s18, 4  ;;  %s609_s6 = scalar_lea.hbm %s856_s3, 16  ;;  %s604_s15 = int_to_ptr.hbm [resolvable:$true] %s603_s15 }
  0x28   : > { %v266_v11 = vld [vmem:[#allocation5 + $0x20] sm:$0xff]  ;;  %v265_v12 = vld [vmem:[#allocation5 + $0x18] sm:$0xff]  ;;  %v264_v13 = vld [vmem:[#allocation5 + $0x10] sm:$0xff]  ;;  %s605_s25 = scalar_lea.hbm %s604_s15, 8  ;;  %p610_p10 = scmp.lt.s32.totalorder %s604_s15, %s856_s3 }
  0x29   : > { %280 = vmatpush.msra.mxu0 %v275_v2  ;;  %v263_v14 = vld [vmem:[#allocation5 + $0x8] sm:$0xff]  ;;  %v262_v15 = vld [vmem:[#allocation5] sm:$0xff]  ;;  %v261_v16 = vld [vmem:[%s799_s11] sm:$0xff]  ;;  %p606_p1 = scmp.ne.s32.totalorder %s604_s15, %s605_s25  ;;  %p611_p11 = scmp.lt.s32.totalorder %s609_s6, %s605_s25 }
  0x2a   : > { %v528_v17 = vld [vmem:[%s855_s2] ss:$0 sm:$0xff] }
  0x2b   : > { %281 = vmatpush.msra.mxu0 %v274_v3  ;;  %p607_p3 = pnand %p606_p1, %p771_p4  ;;  %p612_p12 = por %p611_p11, %p610_p10 }
  0x2d   : > { %282 = vmatpush.msra.mxu0 %v273_v4  ;;  %p608_p9 = pneg %p607_p3 }
  0x2f   : > { %283 = vmatpush.msra.mxu0 %v272_v5  ;;  %p613_p13 = pnand %p612_p12, %p608_p9 }
  0x31   : > { %284 = vmatpush.msra.mxu0 %v271_v6 }
  0x33   : > { %285 = vmatpush.msra.mxu0 %v270_v7 }
  0x35   : > { %286 = vmatpush.msra.mxu0 %v269_v8 }
  0x37   : > { %287 = vmatpush.msra.mxu0 %v268_v9 }
  0x39   : > { %288 = vmatpush.msra.mxu0 %v267_v10 }
  0x3b   : > { %289 = vmatpush.msra.mxu0 %v266_v11 }
  0x3d   : > { %290 = vmatpush.msra.mxu0 %v265_v12 }
  0x3f   : > { %291 = vmatpush.msra.mxu0 %v264_v13 }
  0x41   : > { %292 = vmatpush.msra.mxu0 %v263_v14 }
  0x43   : > { %293 = vmatpush.msra.mxu0 %v262_v15 }
  0x44   : > { %294 = vmatmul.f32.vlgmr.msra.gmra.mxu0 %v261_v16 }
  0xc1   : > { %v295_v18 = vpop.f32.mrf.mxu0 }
  0xc2   : > { %v308_v19 = vadd.f32 %v528_v17, %v295_v18 }
  0xc4   : > { %309 = vst [vmem:[%s250_s21] sm:$0xff] %v308_v19 }
  0xc5   : > { %616 = shalt.err (!%p613_p13)
}
  0xc6   : > { %458 = dma.vmem_to_hbm [thread:$0]  (%p771_p4), %s325_s22, 128, %s327_s18, %s311_s24  }
  0xc7 PF: > { %s338_s28 = sand.u32 1, %s655_s12   ;;  %p469_p0 = pnand %p441_p6, %p779_p7 }
  0xc8   : > { %s339_s19 = scalar_lea.sflag [#allocation4], %s338_s28 }
  0xc9   : > { %p470_p2 = pneg %p469_p0 }
  0xcb   : > { %650 = dma.done.wait (%p470_p2), %s339_s19, 128  }
  0xcc   : > { %652 = vsyncadd (%p470_p2), %s339_s19, 4294967168  ;;  %s20_s17 = sadd.s32 1, %s675_s17   ;;  %s863_s12 = smov %s659_s13 }
  0xcd   : > { %p17_p5 = scmp.ge.s32.totalorder %s20_s17, 4   ;;  %s864_s13 = smov %s663_s14 }
  0xce   : > { %s865_s14 = smov %s777_s8  ;;  %s866_s15 = smov %s671_s16 }
  0xcf   : > { %s867_s16 = smov %s869_s29  ;;  %19 = sbr.rel (!%p17_p5) target bundleno = 7 (0x7), region = 93 }
  0xd4   :  { %345 = vsyncpa [#allocation3], 1 }
  0xd5   :  { %347 = vsyncpa [#allocation3 + $0x1], 1 }
  0xd6   :  { %348 = vsyncpa [#allocation6], 1 }
  0xd7   :  { %349 = vsyncpa [#allocation4], 1 }
  0xd8   :  { %351 = vsyncpa [#allocation4 + $0x1], 1 }

</bundles_post_ra>
